<compile_context>
chip_gen: v5e
topology: v5e:2x2
jax: 0.10.0
libtpu: 0.0.40
codegen_flags: <defaults>
</compile_context>

<pallas_src>
import jax
import jax.numpy as jnp
from jax.experimental import pallas as pl
from jax.experimental.pallas import tpu as pltpu


def _round_up(x, m):
    return (x + m - 1) // m * m


def _pick_row_tile(n_pad, dad_buf_budget_bytes=24 * 1024 * 1024):
    """Largest row tile in {1024,512,256,128} that divides n_pad and whose
    double-buffered bf16 DAD tile fits the budget (keeps us safely inside
    v7x's 64 MiB VMEM and v5e's smaller scoped default)."""
    for tm in (1024, 512, 256, 128):
        if n_pad % tm == 0 and 2 * tm * n_pad * 2 <= dad_buf_budget_bytes:
            return tm
    return 128  # n_pad is always a multiple of 128 by construction


def _gcn_layer_kernel(dad_ref, src_ref, w_ref, out_ref):
    # dad_ref: (tm, Np) bf16   src_ref: (Np, Din) bf16   w_ref: (Din, Dout) bf16
    # Both matmuls accumulate in f32 on the MXU; tanh runs in f32 on the EUP.
    ax = jnp.dot(dad_ref[...], src_ref[...],
                 preferred_element_type=jnp.float32)          # (tm, Din) f32
    h = jnp.dot(ax.astype(jnp.bfloat16), w_ref[...],
                preferred_element_type=jnp.float32)           # (tm, Dout) f32
    out_ref[...] = jnp.tanh(h).astype(out_ref.dtype)


def _gcn_layer(dad, src, w, out_dtype, tm):
    """out = tanh((dad @ src) @ w), row-tiled over dad. All inputs bf16."""
    n_pad = dad.shape[0]
    d_in = src.shape[1]
    d_out = w.shape[1]
    grid = (n_pad // tm,)

    out_itemsize = jnp.dtype(out_dtype).itemsize
    # Double-buffered working set (bf16 inputs + output tile), with margin,
    # clamped to stay well under v7x's 64 MiB physical VMEM.
    vmem_needed = 2 * (tm * n_pad * 2 + n_pad * d_in * 2 + d_in * d_out * 2
                       + tm * d_out * out_itemsize)
    vmem_limit = int(min(max(2 * vmem_needed, 8 * 1024 * 1024),
                         48 * 1024 * 1024))

    flops = 2 * n_pad * n_pad * d_in + 2 * n_pad * d_in * d_out
    bytes_accessed = ((dad.size + src.size + w.size) * 2
                      + n_pad * d_out * out_itemsize)

    return pl.pallas_call(
        _gcn_layer_kernel,
        out_shape=jax.ShapeDtypeStruct((n_pad, d_out), out_dtype),
        grid=grid,
        in_specs=[
            pl.BlockSpec((tm, n_pad), lambda i: (i, 0)),    # row tile of DAD
            pl.BlockSpec((n_pad, d_in), lambda i: (0, 0)),  # full src, resident
            pl.BlockSpec((d_in, d_out), lambda i: (0, 0)),  # full weight, resident
        ],
        out_specs=pl.BlockSpec((tm, d_out), lambda i: (i, 0)),
        compiler_params=pltpu.CompilerParams(
            dimension_semantics=("parallel",),
            vmem_limit_bytes=vmem_limit),
        cost_estimate=pl.CostEstimate(
            flops=flops,
            transcendentals=n_pad * d_out,
            bytes_accessed=bytes_accessed),
    )(dad, src, w)


def gcn_forward(dad, x, w1, w2):
    """dad: (N, N); x: (N, dim_in); w1: (dim_in, dim_in) torch-style (out, in);
    w2: (dim_out, dim_in) torch-style (out, in). Returns (N, dim_out) float32."""
    n, dim_in = x.shape
    dim_out = w2.shape[0]

    # Pad to lane/sublane-friendly sizes (multiples of 128). Zero padding is
    # exact for this computation; the real block is sliced out at the end.
    n_pad = _round_up(max(n, 1), 128)
    di_pad = _round_up(dim_in, 128)
    do_pad = _round_up(dim_out, 128)

    dad_p = jnp.zeros((n_pad, n_pad), jnp.bfloat16)
    dad_p = dad_p.at[:n, :n].set(dad.astype(jnp.bfloat16))
    x_p = jnp.zeros((n_pad, di_pad), jnp.bfloat16)
    x_p = x_p.at[:n, :dim_in].set(x.astype(jnp.bfloat16))
    # Pre-transpose weights (glue) so the kernel right-multiplies.
    w1t_p = jnp.zeros((di_pad, di_pad), jnp.bfloat16)
    w1t_p = w1t_p.at[:dim_in, :dim_in].set(w1.T.astype(jnp.bfloat16))
    w2t_p = jnp.zeros((di_pad, do_pad), jnp.bfloat16)
    w2t_p = w2t_p.at[:dim_in, :dim_out].set(w2.T.astype(jnp.bfloat16))

    tm = _pick_row_tile(n_pad)

    # Layer 1: H = tanh((DAD @ X) @ W1^T)  -- kept in bf16 to feed layer 2's MXU.
    h = _gcn_layer(dad_p, x_p, w1t_p, jnp.bfloat16, tm)
    # Layer 2: Y = tanh((DAD @ H) @ W2^T)  -- final output in f32.
    y = _gcn_layer(dad_p, h, w2t_p, jnp.float32, tm)

    return y[:n, :dim_out]


def _linear_init(key, fan_out, fan_in):
    # Deterministic stand-in for nn.Linear's default uniform(-1/sqrt(in), 1/sqrt(in)).
    bound = 1.0 / jnp.sqrt(jnp.float32(fan_in))
    return jax.random.uniform(key, (fan_out, fan_in), jnp.float32,
                              minval=-bound, maxval=bound)


if __name__ == "__main__":
    # Small synthetic problem: N=8 graph nodes, dim_in=32, dim_out=16.
    N, DIM_IN, DIM_OUT = 8, 32, 16

    key = jax.random.PRNGKey(0)
    k_dad, k_x, k_w1, k_w2 = jax.random.split(key, 4)

    # Symmetric-normalized adjacency DAD = D^-1/2 (A + I) D^-1/2.
    a = (jax.random.uniform(k_dad, (N, N)) > 0.5).astype(jnp.float32)
    a = jnp.maximum(a, a.T) + jnp.eye(N, dtype=jnp.float32)
    deg = jnp.sum(a, axis=1)
    d_inv_sqrt = 1.0 / jnp.sqrt(deg)
    dad = a * d_inv_sqrt[:, None] * d_inv_sqrt[None, :]

    x = jax.random.normal(k_x, (N, DIM_IN), jnp.float32)
    w1 = _linear_init(k_w1, DIM_IN, DIM_IN)    # fc1.weight: (dim_in, dim_in)
    w2 = _linear_init(k_w2, DIM_OUT, DIM_IN)   # fc2.weight: (dim_out, dim_in)

    out = jax.block_until_ready(gcn_forward(dad, x, w1, w2))

    # Pure-JAX f32 reference (same semantics as the torch forward).
    ref = jnp.tanh((dad @ jnp.tanh((dad @ x) @ w1.T)) @ w2.T)

    assert out.shape == (N, DIM_OUT)
    max_err = float(jnp.max(jnp.abs(out - ref)))
    assert jnp.allclose(out, ref, atol=2e-2, rtol=2e-2), max_err

    print("KERNEL_OK")
</pallas_src>

<mosaic_0001>
module attributes {stable_mosaic.version = 11 : i64} {
  func.func @_gcn_layer_kernel(%arg0: i32, %arg1: memref<128x128xbf16, #tpu.memory_space<vmem>>, %arg2: memref<128x128xbf16, #tpu.memory_space<vmem>>, %arg3: memref<128x128xbf16, #tpu.memory_space<vmem>>, %arg4: memref<128x128xbf16, #tpu.memory_space<vmem>>) attributes {dimension_semantics = [#tpu.dimension_semantics<parallel>], iteration_bounds = array<i64: 1>, scalar_prefetch = 0 : i64, scratch_operands = 0 : i64, tpu.core_type = #tpu.core_type<tc>, window_params = [{transform_indices = @transform_0, window_bounds = array<i64: 128, 128>}, {pipeline_mode = #tpu.pipeline_mode<synchronous>, transform_indices = @transform_1, window_bounds = array<i64: 128, 128>}, {pipeline_mode = #tpu.pipeline_mode<synchronous>, transform_indices = @transform_2, window_bounds = array<i64: 128, 128>}, {transform_indices = @transform_3, window_bounds = array<i64: 128, 128>}]} {
    %c0 = arith.constant 0 : index
    %c0_0 = arith.constant 0 : index
    %0 = vector.load %arg1[%c0, %c0_0] : memref<128x128xbf16, #tpu.memory_space<vmem>>, vector<128x128xbf16>
    %c0_1 = arith.constant 0 : index
    %c0_2 = arith.constant 0 : index
    %1 = vector.load %arg2[%c0_1, %c0_2] : memref<128x128xbf16, #tpu.memory_space<vmem>>, vector<128x128xbf16>
    %cst = arith.constant dense<0.000000e+00> : vector<128x128xf32>
    %2 = tpu.matmul %0, %1, %cst {dimension_numbers = #tpu.dot_dimension_numbers<[1], [0], [0], [1], [0, 0, 1, 1], [], []>} : vector<128x128xbf16>, vector<128x128xbf16>, vector<128x128xf32> -> vector<128x128xf32>
    %3 = arith.truncf %2 : vector<128x128xf32> to vector<128x128xbf16>
    %c0_3 = arith.constant 0 : index
    %c0_4 = arith.constant 0 : index
    %4 = vector.load %arg3[%c0_3, %c0_4] : memref<128x128xbf16, #tpu.memory_space<vmem>>, vector<128x128xbf16>
    %cst_5 = arith.constant dense<0.000000e+00> : vector<128x128xf32>
    %5 = tpu.matmul %3, %4, %cst_5 {dimension_numbers = #tpu.dot_dimension_numbers<[1], [0], [0], [1], [0, 0, 1, 1], [], []>} : vector<128x128xbf16>, vector<128x128xbf16>, vector<128x128xf32> -> vector<128x128xf32>
    %6 = math.tanh %5 : vector<128x128xf32>
    %7 = arith.truncf %6 : vector<128x128xf32> to vector<128x128xbf16>
    %c0_6 = arith.constant 0 : index
    %c0_7 = arith.constant 0 : index
    %8 = vector.load %arg4[%c0_6, %c0_7] : memref<128x128xbf16, #tpu.memory_space<vmem>>, vector<128x128xbf16>
    tpu.vector_store %arg4[%c0_6, %c0_7], %7 {strides = array<i32>} : memref<128x128xbf16, #tpu.memory_space<vmem>>, vector<128x128xbf16>,
    return
  }
  func.func @transform_0(%arg0: i32) -> (i32, i32) {
    %c0_i32 = arith.constant 0 : i32
    %c0_i32_0 = arith.constant 0 : i32
    return %arg0, %c0_i32 : i32, i32
  }
  func.func @transform_1(%arg0: i32) -> (i32, i32) {
    %c0_i32 = arith.constant 0 : i32
    %c0_i32_0 = arith.constant 0 : i32
    %c0_i32_1 = arith.constant 0 : i32
    return %c0_i32, %c0_i32_0 : i32, i32
  }
  func.func @transform_2(%arg0: i32) -> (i32, i32) {
    %c0_i32 = arith.constant 0 : i32
    %c0_i32_0 = arith.constant 0 : i32
    %c0_i32_1 = arith.constant 0 : i32
    return %c0_i32, %c0_i32_0 : i32, i32
  }
  func.func @transform_3(%arg0: i32) -> (i32, i32) {
    %c0_i32 = arith.constant 0 : i32
    %c0_i32_0 = arith.constant 0 : i32
    return %arg0, %c0_i32 : i32, i32
  }
}

</mosaic_0001>

<bundles_post_ra>
// kernel: tpu_custom_call.1
= control target key start
LH: loop header
LB: loop body
LE: loop exit
PB: predicated region body
PF: predicated region fallthrough
CT: control target
= control target key end

     0   :  { %8 = vsyncpa [#allocation3], 0  ;;  %s801_s0 = inlined_call_operand.hbm [shape: bf16[128,128], index: 0, kind: input, shape index: {}]   ;;  %s802_s1 = inlined_call_operand.hbm [shape: bf16[128,128], index: 1, kind: input, shape index: {}]   ;;  %s803_s2 = inlined_call_operand.hbm [shape: bf16[128,128], index: 2, kind: input, shape index: {}]   ;;  %s804_s3 = inlined_call_operand.hbm [shape: bf16[128,128], index: 3, kind: output, shape index: {}]  }
   0x1   :  { %9 = vsyncpa [#allocation6], 0 }
   0x2   :  { %10 = vsyncpa [#allocation4], 0  ;;  %s28_s14 = sshll.u32 %s802_s1, 4  ;;  %s751_s15 = smov [#allocation5]   ;;  %s29_s14 = int_to_ptr.hbm [resolvable:$true] %s28_s14 }
   0x3   :  { %s30_s16 = sshll.u32 %s751_s15, 4  ;;  %s15_s19 = sshll.u32 %s801_s0, 4  ;;  %s31_s16 = int_to_ptr.vmem [resolvable:$true] %s30_s16  ;;  %s16_s19 = int_to_ptr.hbm [resolvable:$true] %s15_s19 }
   0x4   :  { %s752_s20 = smov 64   ;;  %s753_s21 = smov 4  }
   0x5   :  { %36 = dma.hbm_to_vmem [thread:$0]  %s29_s14, 1024, %s31_s16, [#allocation6], %s752_s20, %s752_s20, %s753_s21  }
   0x6   :  { %s754_s22 = smov [#allocation2]   ;;  %s41_s1 = sshll.u32 %s803_s2, 4  ;;  %s42_s1 = int_to_ptr.hbm [resolvable:$true] %s41_s1 }
   0x7   :  { %s17_s23 = sshll.u32 %s754_s22, 4  ;;  %s755_s0 = smov [#allocation7]   ;;  %s18_s23 = int_to_ptr.vmem [resolvable:$true] %s17_s23 }
   0x8   :  { %23 = dma.hbm_to_vmem [thread:$0]  %s16_s19, 1024, %s18_s23, [#allocation3], %s752_s20, %s752_s20, %s753_s21  }
   0x9   :  { %s43_s26 = sshll.u32 %s755_s0, 4  ;;  %s44_s26 = int_to_ptr.vmem [resolvable:$true] %s43_s26 }
   0xa   :  { %49 = dma.hbm_to_vmem [thread:$0]  %s42_s1, 1024, %s44_s26, [#allocation6], %s752_s20, %s752_s20, %s753_s21  }
   0xb   :  { %745 = dma.done.wait [#allocation3], 1024  }
   0xc   :  { %746 = vsyncadd [#allocation3], 4294966272 }
   0xd   :  { %747 = dma.done.wait [#allocation6], 2048  }
   0xe   :  { %748 = vsyncadd [#allocation6], 4294965248  ;;  %v539_v0 = vld [vmem:[#allocation5 + $0x38] sm:$0xff]  ;;  %v538_v1 = vld [vmem:[#allocation5 + $0x30] sm:$0xff]  ;;  %s756_s2 = smov [#allocation8]   ;;  %s414_s30 = sshll.u32 %s804_s3, 4  ;;  %s415_s30 = int_to_ptr.hbm [resolvable:$true] %s414_s30 }
   0xf   :  { %190 = vmatpush.bf16.msra.mxu0 %v539_v0  ;;  %595 = vmatpush.bf16.msra.mxu2 %v539_v0  ;;  %v537_v2 = vld [vmem:[#allocation5 + $0x28] sm:$0xff]  ;;  %v536_v3 = vld [vmem:[#allocation5 + $0x20] sm:$0xff]  ;;  %v535_v4 = vld [vmem:[#allocation5 + $0x18] sm:$0xff]  ;;  %s412_s27 = sshll.u32 %s756_s2, 4  ;;  %s413_s27 = int_to_ptr.vmem [resolvable:$true] %s412_s27 }
  0x10   :  { %v534_v5 = vld [vmem:[#allocation5 + $0x10] sm:$0xff]  ;;  %v533_v6 = vld [vmem:[#allocation5 + $0x8] sm:$0xff]  ;;  %v532_v7 = vld [vmem:[#allocation5] sm:$0xff] }
  0x11   :  { %v524_v8 = vld [vmem:[#allocation2] sm:$0xff]  ;;  %v525_v10 = vld [vmem:[#allocation2 + $0x8] sm:$0xff]  ;;  %v547_v12 = vld [vmem:[#allocation7 + $0x38] sm:$0xff] }
  0x12   :  { %v528_v9 = vld [vmem:[#allocation2 + $0x20] sm:$0xff]  ;;  %v529_v11 = vld [vmem:[#allocation2 + $0x28] sm:$0xff]  ;;  %311 = vmatpush.bf16.msra.mxu1 %v547_v12  ;;  %v546_v13 = vld [vmem:[#allocation7 + $0x30] sm:$0xff]  ;;  %603 = vmatpush.bf16.msra.mxu3 %v547_v12 }
  0x13   :  { %191 = vmatpush.bf16.msra.mxu0 %v538_v1  ;;  %596 = vmatpush.bf16.msra.mxu2 %v538_v1  ;;  %v545_v14 = vld [vmem:[#allocation7 + $0x28] sm:$0xff]  ;;  %v544_v15 = vld [vmem:[#allocation7 + $0x20] sm:$0xff]  ;;  %v526_v16 = vld [vmem:[#allocation2 + $0x10] sm:$0xff] }
  0x14   :  { %v530_v17 = vld [vmem:[#allocation2 + $0x30] sm:$0xff]  ;;  %v543_v18 = vld [vmem:[#allocation7 + $0x18] sm:$0xff]  ;;  %v541_v22 = vld [vmem:[#allocation7 + $0x8] sm:$0xff] }
  0x15   :  { %v527_v19 = vld [vmem:[#allocation2 + $0x18] sm:$0xff]  ;;  %v542_v21 = vld [vmem:[#allocation7 + $0x10] sm:$0xff]  ;;  %v540_v23 = vld [vmem:[#allocation7] sm:$0xff] }
  0x16   :  { %312 = vmatpush.bf16.msra.mxu1 %v546_v13  ;;  %604 = vmatpush.bf16.msra.mxu3 %v546_v13  ;;  %v531_v20 = vld [vmem:[#allocation2 + $0x38] sm:$0xff] }
  0x17   :  { %192 = vmatpush.bf16.msra.mxu0 %v537_v2  ;;  %597 = vmatpush.bf16.msra.mxu2 %v537_v2 }
  0x1a   :  { %313 = vmatpush.bf16.msra.mxu1 %v545_v14  ;;  %605 = vmatpush.bf16.msra.mxu3 %v545_v14 }
  0x1b   :  { %193 = vmatpush.bf16.msra.mxu0 %v536_v3  ;;  %598 = vmatpush.bf16.msra.mxu2 %v536_v3 }
  0x1e   :  { %314 = vmatpush.bf16.msra.mxu1 %v544_v15  ;;  %606 = vmatpush.bf16.msra.mxu3 %v544_v15 }
  0x1f   :  { %194 = vmatpush.bf16.msra.mxu0 %v535_v4  ;;  %599 = vmatpush.bf16.msra.mxu2 %v535_v4 }
  0x22   :  { %315 = vmatpush.bf16.msra.mxu1 %v543_v18  ;;  %607 = vmatpush.bf16.msra.mxu3 %v543_v18 }
  0x23   :  { %195 = vmatpush.bf16.msra.mxu0 %v534_v5  ;;  %600 = vmatpush.bf16.msra.mxu2 %v534_v5 }
  0x26   :  { %316 = vmatpush.bf16.msra.mxu1 %v542_v21  ;;  %608 = vmatpush.bf16.msra.mxu3 %v542_v21 }
  0x27   :  { %196 = vmatpush.bf16.msra.mxu0 %v533_v6  ;;  %601 = vmatpush.bf16.msra.mxu2 %v533_v6 }
  0x2a   :  { %317 = vmatpush.bf16.msra.mxu1 %v541_v22  ;;  %609 = vmatpush.bf16.msra.mxu3 %v541_v22 }
  0x2b   :  { %197 = vmatpush.bf16.msra.mxu0 %v532_v7  ;;  %602 = vmatpush.bf16.msra.mxu2 %v532_v7 }
  0x2e   :  { %198 = vmatmul.bf16.vlgmr.msra.gmra.mxu0 %v524_v8  ;;  %218 = vmatmul.bf16.vlgmr.msra.gmra.mxu2 %v528_v9 }
  0x2f   :  { %318 = vmatpush.bf16.msra.mxu1 %v540_v23  ;;  %610 = vmatpush.bf16.msra.mxu3 %v540_v23 }
  0x3e   :  { %203 = vmatmul.bf16.gmra.mxu0 %v525_v10  ;;  %223 = vmatmul.bf16.gmra.mxu2 %v529_v11 }
  0x4e   :  { %208 = vmatmul.bf16.gmra.mxu0 %v526_v16  ;;  %228 = vmatmul.bf16.gmra.mxu2 %v530_v17 }
  0x5e   :  { %213 = vmatmul.bf16.gmra.mxu0 %v527_v19  ;;  %233 = vmatmul.bf16.gmra.mxu2 %v531_v20 }
  0xab   :  { %v199_v24 = vpop.f32.mrf.mxu0 }
  0xb1   :  { %v219_v25 = vpop.f32.mrf.mxu2 }
  0xb3   :  { %v201_v26 = vpop.f32.mrf.mxu0 }
  0xb4   :  { %v239_v27 = vpack.c.bf16 %v201_v26, %v199_v24 }
  0xb6   :  { %319 = vmatmul.bf16.vlgmr.msra.gmra.mxu1 %v239_v27 }
  0xb9   :  { %v221_v28 = vpop.f32.mrf.mxu2 }
  0xba   :  { %v243_v29 = vpack.c.bf16 %v221_v28, %v219_v25 }
  0xbb   :  { %v204_v30 = vpop.f32.mrf.mxu0 }
  0xbc   :  { %339 = vmatmul.bf16.vlgmr.msra.gmra.mxu3 %v243_v29 }
  0xc1   :  { %v224_v31 = vpop.f32.mrf.mxu2 }
  0xc3   :  { %v206_v32 = vpop.f32.mrf.mxu0 }
  0xc4   :  { %v240_v33 = vpack.c.bf16 %v206_v32, %v204_v30 }
  0xc6   :  { %324 = vmatmul.bf16.gmra.mxu1 %v240_v33 }
  0xc9   :  { %v226_v34 = vpop.f32.mrf.mxu2 }
  0xca   :  { %v244_v35 = vpack.c.bf16 %v226_v34, %v224_v31 }
  0xcb   :  { %v209_v36 = vpop.f32.mrf.mxu0 }
  0xcc   :  { %344 = vmatmul.bf16.gmra.mxu3 %v244_v35 }
  0xd1   :  { %v229_v37 = vpop.f32.mrf.mxu2 }
  0xd3   :  { %v211_v38 = vpop.f32.mrf.mxu0 }
  0xd4   :  { %v241_v39 = vpack.c.bf16 %v211_v38, %v209_v36 }
  0xd6   :  { %329 = vmatmul.bf16.gmra.mxu1 %v241_v39 }
  0xd9   :  { %v231_v40 = vpop.f32.mrf.mxu2 }
  0xda   :  { %v245_v41 = vpack.c.bf16 %v231_v40, %v229_v37 }
  0xdb   :  { %v214_v42 = vpop.f32.mrf.mxu0 }
  0xdc   :  { %349 = vmatmul.bf16.gmra.mxu3 %v245_v41 }
  0xe1   :  { %v234_v43 = vpop.f32.mrf.mxu2 }
  0xe3   :  { %v216_v44 = vpop.f32.mrf.mxu0 }
  0xe4   :  { %v242_v45 = vpack.c.bf16 %v216_v44, %v214_v42 }
  0xe6   :  { %334 = vmatmul.bf16.gmra.mxu1 %v242_v45 }
  0xe9   :  { %v236_v46 = vpop.f32.mrf.mxu2 }
  0xea   :  { %v246_v47 = vpack.c.bf16 %v236_v46, %v234_v43 }
  0xec   :  { %354 = vmatmul.bf16.gmra.mxu3 %v246_v47 }
 0x133   :  { %v320_v48 = vpop.f32.mrf.mxu1 }
 0x134   :  { %617 = vtanh.f32 %v320_v48 }
 0x13a   :  { %v618_v51 = vpop.eup %617 }
 0x13b   :  { %v322_v49 = vpop.f32.mrf.mxu1 }
 0x13c   :  { %619 = vtanh.f32 %v322_v49 }
 0x13f   :  { %v340_v50 = vpop.f32.mrf.mxu3 }
 0x140   :  { %621 = vtanh.f32 %v340_v50 }
 0x142   :  { %v620_v52 = vpop.eup %619 }
 0x143   :  { %v551_v53 = vpack.c.bf16 %v620_v52, %v618_v51  ;;  %v325_v54 = vpop.f32.mrf.mxu1 }
 0x145   :  { %552 = vst [vmem:[#allocation8] sm:$0xff] %v551_v53  }
 0x146   :  { %v622_v57 = vpop.eup %621 }
 0x147   :  { %v342_v55 = vpop.f32.mrf.mxu3 }
 0x148   :  { %623 = vtanh.f32 %v342_v55 }
 0x149   :  { %625 = vtanh.f32 %v325_v54 }
 0x14b   :  { %v327_v56 = vpop.f32.mrf.mxu1 }
 0x14c   :  { %627 = vtanh.f32 %v327_v56 }
 0x14e   :  { %v624_v58 = vpop.eup %623 }
 0x14f   :  { %v571_v59 = vpack.c.bf16 %v624_v58, %v622_v57  ;;  %v345_v60 = vpop.f32.mrf.mxu3  ;;  %v626_v61 = vpop.eup %625 }
 0x150   :  { %629 = vtanh.f32 %v345_v60 }
 0x151   :  { %591 = vst [vmem:[#allocation8 + $0x20] sm:$0xff] %v571_v59  }
 0x152   :  { %v628_v62 = vpop.eup %627 }
 0x153   :  { %v556_v63 = vpack.c.bf16 %v628_v62, %v626_v61  ;;  %v330_v0 = vpop.f32.mrf.mxu1 }
 0x155   :  { %588 = vst [vmem:[#allocation8 + $0x8] sm:$0xff] %v556_v63  }
 0x156   :  { %v630_v3 = vpop.eup %629 }
 0x157   :  { %v347_v1 = vpop.f32.mrf.mxu3 }
 0x158   :  { %631 = vtanh.f32 %v347_v1 }
 0x159   :  { %633 = vtanh.f32 %v330_v0 }
 0x15b   :  { %v332_v2 = vpop.f32.mrf.mxu1 }
 0x15c   :  { %635 = vtanh.f32 %v332_v2 }
 0x15e   :  { %v632_v4 = vpop.eup %631 }
 0x15f   :  { %v576_v5 = vpack.c.bf16 %v632_v4, %v630_v3  ;;  %v350_v6 = vpop.f32.mrf.mxu3  ;;  %v634_v7 = vpop.eup %633 }
 0x160   :  { %637 = vtanh.f32 %v350_v6 }
 0x161   :  { %592 = vst [vmem:[#allocation8 + $0x28] sm:$0xff] %v576_v5  }
 0x162   :  { %v636_v8 = vpop.eup %635 }
 0x163   :  { %v561_v9 = vpack.c.bf16 %v636_v8, %v634_v7  ;;  %v335_v10 = vpop.f32.mrf.mxu1 }
 0x165   :  { %589 = vst [vmem:[#allocation8 + $0x10] sm:$0xff] %v561_v9  }
 0x166   :  { %v638_v13 = vpop.eup %637 }
 0x167   :  { %v352_v11 = vpop.f32.mrf.mxu3 }
 0x168   :  { %639 = vtanh.f32 %v352_v11 }
 0x169   :  { %641 = vtanh.f32 %v335_v10 }
 0x16b   :  { %v337_v12 = vpop.f32.mrf.mxu1 }
 0x16c   :  { %643 = vtanh.f32 %v337_v12 }
 0x16e   :  { %v640_v14 = vpop.eup %639 }
 0x16f   :  { %v581_v15 = vpack.c.bf16 %v640_v14, %v638_v13  ;;  %v355_v16 = vpop.f32.mrf.mxu3  ;;  %v642_v17 = vpop.eup %641 }
 0x170   :  { %645 = vtanh.f32 %v355_v16 }
 0x171   :  { %593 = vst [vmem:[#allocation8 + $0x30] sm:$0xff] %v581_v15  }
 0x172   :  { %v644_v18 = vpop.eup %643 }
 0x173   :  { %v566_v19 = vpack.c.bf16 %v644_v18, %v642_v17 }
 0x175   :  { %590 = vst [vmem:[#allocation8 + $0x18] sm:$0xff] %v566_v19  }
 0x176   :  { %v646_v21 = vpop.eup %645 }
 0x177   :  { %v357_v20 = vpop.f32.mrf.mxu3 }
 0x178   :  { %647 = vtanh.f32 %v357_v20 }
 0x17e   :  { %v648_v22 = vpop.eup %647 }
 0x17f   :  { %v586_v23 = vpack.c.bf16 %v648_v22, %v646_v21 }
 0x181   :  { %594 = vst [vmem:[#allocation8 + $0x38] sm:$0xff] %v586_v23  }
 0x182   :  { %420 = dma.vmem_to_hbm [thread:$0]  %s413_s27, 1024, %s415_s30, [#allocation4], %s752_s20, %s752_s20, %s753_s21  }
 0x183   :  { %749 = dma.done.wait [#allocation4], 1024  }
 0x184   :  { %750 = vsyncadd [#allocation4], 4294966272 }
 0x185   :  { %425 = vsyncpa [#allocation3], 1 }
 0x186   :  { %426 = vsyncpa [#allocation6], 1 }
 0x187   :  { %427 = vsyncpa [#allocation4], 1 }

</bundles_post_ra>
